<compile_context>
chip_gen: v6e
topology: v6e:2x2x1
jax: 0.10.0
libtpu: 0.0.40
codegen_flags: <defaults>
</compile_context>

<pallas_src>
import functools

import jax
import jax.numpy as jnp
from jax.experimental import pallas as pl
from jax.experimental.pallas import tpu as pltpu


_INV_SQRT2 = 0.7071067811865476
_SQRT_2_OVER_PI = 0.7978845608028654


def _gelu(x, approximate):
    if approximate:
        # tanh-approximate GELU: the transcendental goes to the (otherwise idle)
        # EUP slot instead of a long erf polynomial on the VALU.
        return 0.5 * x * (1.0 + jnp.tanh(_SQRT_2_OVER_PI * (x + 0.044715 * x * x * x)))
    # Exact erf-based GELU: matches torch.nn.functional.gelu default.
    return 0.5 * x * (1.0 + jax.lax.erf(x * _INV_SQRT2))


def feedforward_kernel(xT_ref, w1T_ref, b1_ref, w2T_ref, b2_ref, oT_ref, *,
                       gelu_approx):
    """One token tile, feature-major.

    xT_ref  : (C, TN)    input tile (compute dtype)
    w1T_ref : (2H, C)    fused GEGLU proj, transposed (rows [0:H]=value, [H:2H]=gate)
    b1_ref  : (2H, 1)    f32 bias (same row order)
    w2T_ref : (C, H)     output Linear weight, transposed (resident)
    b2_ref  : (C, 1)     f32 bias
    oT_ref  : (C, TN)    output tile
    """
    H = w1T_ref.shape[0] // 2
    xT = xT_ref[...]                                                    # (C, TN)

    # Single fused GEGLU projection on the MXU (2H rows fill v5e's 128-row MXU).
    h = jnp.dot(w1T_ref[...], xT,
                preferred_element_type=jnp.float32) + b1_ref[...]      # (2H, TN) f32

    # Sublane-aligned split into value / gate halves (H is a multiple of 8).
    a = h[:H]                                                           # (H, TN)
    g = h[H:]                                                           # (H, TN)

    # GELU + gating in f32 (v5e's VPU/EUP have no bf16; preserves accuracy).
    u = a * _gelu(g, gelu_approx)                                       # (H, TN) f32

    # Output Linear; downcast activation to the weight/compute dtype before the
    # MXU, accumulate in f32.
    y = jnp.dot(w2T_ref[...], u.astype(w2T_ref.dtype),
                preferred_element_type=jnp.float32) + b2_ref[...]       # (C, TN) f32

    oT_ref[...] = y.astype(oT_ref.dtype)


def _round_up(a, b):
    return pl.cdiv(a, b) * b


def _choose_tn(n_pad, tile_n):
    """Largest multiple of 128 <= tile_n dividing n_pad; prefer an even grid
    (so v7x's 2 TensorCores split the parallel axis evenly) when that costs at
    most a 2x smaller tile."""
    best, best_even = 128, None
    tn = 128
    limit = min(tile_n, n_pad)
    while tn <= limit:
        if n_pad % tn == 0:
            best = tn
            if (n_pad // tn) % 2 == 0:
                best_even = tn
        tn += 128
    if best_even is not None and 2 * best_even >= best:
        return best_even
    return best


def feedforward(x, w1, b1, w2, b2, *, tile_n=1024, compute_dtype=None,
                gelu_approx=False):
    """x: (B, S, C); w1: (C, 2H); b1: (2H,); w2: (H, C); b2: (C,).

    compute_dtype: optional matmul-input dtype (e.g. jnp.bfloat16 on real TPU
    hardware); defaults to x.dtype. Accumulation and GELU math stay f32.
    """
    B, S, C = x.shape
    H2 = w1.shape[1]
    H = H2 // 2
    N = B * S
    out_dtype = x.dtype
    cdt = jnp.dtype(compute_dtype) if compute_dtype is not None else jnp.dtype(x.dtype)

    assert tile_n % 128 == 0, "tile_n must be a multiple of 128 lanes"
    N_pad = _round_up(N, 128)          # pad only to lane width, not to the tile
    TN = _choose_tn(N_pad, tile_n)
    grid = (N_pad // TN,)

    # --- wrapper-side layout plumbing (feature-major, lane-dense) -----------
    # TODO(synk): this transpose/pad is an extra HBM pass over x / y; if adjacent
    # layers also use this kernel, keep activations feature-major (C, N)
    # end-to-end (or verify in HLO that transpose+pad+convert fuse) and drop it.
    xT = x.reshape(N, C).T                                   # (C, N)
    if N_pad != N:
        xT = jnp.pad(xT, ((0, 0), (0, N_pad - N)))
    xT = xT.astype(cdt)

    w1T = w1.T.astype(cdt)                                   # (2H, C) fused value|gate
    w2T = w2.T.astype(cdt)                                   # (C, H)
    b1c = b1.reshape(H2, 1).astype(jnp.float32)
    b2c = b2.reshape(C, 1).astype(jnp.float32)

    # --- VMEM budget: resident weights + double-buffered x/out tiles + f32
    #     intermediates (h, u, y). Cap at 48 MiB (headroom under v7x's 64 MiB).
    cdt_bytes = jnp.dtype(cdt).itemsize
    out_bytes = jnp.dtype(out_dtype).itemsize
    resident = (H2 * C + C * H) * cdt_bytes + (H2 + C) * 4
    io_bufs = 2 * C * TN * (cdt_bytes + out_bytes)
    interm = (H2 * TN + H * TN + C * TN) * 4
    vmem_limit = int(min(max(2 * (resident + io_bufs + interm), 16 << 20), 48 << 20))

    cost = pl.CostEstimate(
        flops=6 * N_pad * C * H,                  # 2*N*C*(2H) + 2*N*H*C
        transcendentals=N_pad * H,                # one erf/tanh per gate element
        bytes_accessed=(N_pad * C * (cdt_bytes + out_bytes)       # x read + y write
                        + (H2 * C + C * H) * cdt_bytes            # weights
                        + (H2 + C) * 4),                          # biases
    )

    kernel = pl.pallas_call(
        functools.partial(feedforward_kernel, gelu_approx=gelu_approx),
        out_shape=jax.ShapeDtypeStruct((C, N_pad), out_dtype),
        grid=grid,
        in_specs=[
            pl.BlockSpec((C, TN), lambda i: (0, i)),        # x^T tile (pipelined)
            pl.BlockSpec((H2, C), lambda i: (0, 0)),        # W1^T fused (resident)
            pl.BlockSpec((H2, 1), lambda i: (0, 0)),        # b1     (resident)
            pl.BlockSpec((C, H), lambda i: (0, 0)),         # W2^T   (resident)
            pl.BlockSpec((C, 1), lambda i: (0, 0)),         # b2     (resident)
        ],
        out_specs=pl.BlockSpec((C, TN), lambda i: (0, i)),  # lane-dense store
        compiler_params=pltpu.CompilerParams(
            dimension_semantics=("parallel",),              # shards across v7x's 2 TCs
            vmem_limit_bytes=vmem_limit,
        ),
        cost_estimate=cost,
    )
    oT = kernel(xT, w1T, b1c, w2T, b2c)

    return oT[:, :N].T.reshape(B, S, C)


if __name__ == "__main__":
    # Shapes consistent with FeedForward(channels=16, mult=4):
    #   hidden H = 64, GEGLU proj weight (16, 128), out Linear weight (64, 16).
    B, S, C, MULT = 2, 8, 16, 4
    H = C * MULT

    key = jax.random.PRNGKey(0)
    kx, k1, k2, k3, k4 = jax.random.split(key, 5)

    x = jax.random.normal(kx, (B, S, C), dtype=jnp.float32)
    # Deterministic synthetic parameters (not a checkpoint load).
    w1 = jax.random.normal(k1, (C, 2 * H), dtype=jnp.float32) * 0.05  # GEGLU proj
    b1 = jax.random.normal(k2, (2 * H,), dtype=jnp.float32) * 0.05
    w2 = jax.random.normal(k3, (H, C), dtype=jnp.float32) * 0.05      # out Linear
    b2 = jax.random.normal(k4, (C,), dtype=jnp.float32) * 0.05

    # Pure-JAX reference (same math, no Pallas). Exact erf GELU (torch default).
    h_ref = x @ w1 + b1
    a_ref, g_ref = h_ref[..., :H], h_ref[..., H:]
    u_ref = a_ref * (0.5 * g_ref * (1.0 + jax.lax.erf(g_ref / jnp.sqrt(2.0))))
    y_ref = u_ref @ w2 + b2

    # Default path: f32 compute, exact erf GELU -> tight tolerance.
    ff = jax.jit(functools.partial(feedforward, tile_n=1024))
    y = ff(x, w1, b1, w2, b2)
    jax.block_until_ready(y)
    assert jnp.allclose(y, y_ref, atol=1e-5, rtol=1e-5), "f32 mismatch vs reference"

    # Optional tanh-approx GELU (EUP instead of VALU erf poly) -> loose tolerance.
    ff_approx = jax.jit(functools.partial(feedforward, tile_n=1024, gelu_approx=True))
    y_approx = ff_approx(x, w1, b1, w2, b2)
    jax.block_until_ready(y_approx)
    assert jnp.allclose(y_approx, y_ref, atol=5e-3, rtol=5e-3), \
        "approx-gelu mismatch vs reference"

    print("KERNEL_OK")
</pallas_src>

<mosaic_0001>
module attributes {stable_mosaic.version = 11 : i64} {
  func.func @feedforward_kernel(%arg0: i32, %arg1: memref<16x128xf32, #tpu.memory_space<vmem>>, %arg2: memref<128x16xf32, #tpu.memory_space<vmem>>, %arg3: memref<128x1xf32, #tpu.memory_space<vmem>>, %arg4: memref<16x64xf32, #tpu.memory_space<vmem>>, %arg5: memref<16x1xf32, #tpu.memory_space<vmem>>, %arg6: memref<16x128xf32, #tpu.memory_space<vmem>>) attributes {dimension_semantics = [#tpu.dimension_semantics<parallel>], iteration_bounds = array<i64: 1>, scalar_prefetch = 0 : i64, scratch_operands = 0 : i64, tpu.core_type = #tpu.core_type<tc>, window_params = [{transform_indices = @transform_0, window_bounds = array<i64: 16, 128>}, {pipeline_mode = #tpu.pipeline_mode<synchronous>, transform_indices = @transform_1, window_bounds = array<i64: 128, 16>}, {pipeline_mode = #tpu.pipeline_mode<synchronous>, transform_indices = @transform_2, window_bounds = array<i64: 128, 1>}, {pipeline_mode = #tpu.pipeline_mode<synchronous>, transform_indices = @transform_3, window_bounds = array<i64: 16, 64>}, {pipeline_mode = #tpu.pipeline_mode<synchronous>, transform_indices = @transform_4, window_bounds = array<i64: 16, 1>}, {transform_indices = @transform_5, window_bounds = array<i64: 16, 128>}]} {
    %c0 = arith.constant 0 : index
    %c0_0 = arith.constant 0 : index
    %0 = vector.load %arg1[%c0, %c0_0] : memref<16x128xf32, #tpu.memory_space<vmem>>, vector<16x128xf32>
    %c0_1 = arith.constant 0 : index
    %c0_2 = arith.constant 0 : index
    %1 = vector.load %arg2[%c0_1, %c0_2] : memref<128x16xf32, #tpu.memory_space<vmem>>, vector<128x16xf32>
    %cst = arith.constant dense<0.000000e+00> : vector<128x128xf32>
    %2 = tpu.matmul %1, %0, %cst {dimension_numbers = #tpu.dot_dimension_numbers<[1], [0], [0], [1], [0, 0, 1, 1], [], []>} : vector<128x16xf32>, vector<16x128xf32>, vector<128x128xf32> -> vector<128x128xf32>
    %c0_3 = arith.constant 0 : index
    %c0_4 = arith.constant 0 : index
    %3 = vector.load %arg3[%c0_3, %c0_4] : memref<128x1xf32, #tpu.memory_space<vmem>>, vector<128x1xf32>
    %4 = vector.broadcast %3 : vector<128x1xf32> to vector<128x128xf32>
    %5 = arith.addf %2, %4 : vector<128x128xf32>
    %6 = vector.extract_strided_slice %5 {offsets = [0, 0], sizes = [64, 128], strides = [1, 1]} : vector<128x128xf32> to vector<64x128xf32>
    %7 = vector.extract_strided_slice %5 {offsets = [64, 0], sizes = [64, 128], strides = [1, 1]} : vector<128x128xf32> to vector<64x128xf32>
    %cst_5 = arith.constant 5.000000e-01 : f32
    %8 = vector.broadcast %cst_5 : f32 to vector<64x128xf32>
    %9 = arith.mulf %8, %7 : vector<64x128xf32>
    %cst_6 = arith.constant 0.707106769 : f32
    %10 = vector.broadcast %cst_6 : f32 to vector<64x128xf32>
    %11 = arith.mulf %7, %10 : vector<64x128xf32>
    %12 = math.erf %11 : vector<64x128xf32>
    %cst_7 = arith.constant 1.000000e+00 : f32
    %13 = vector.broadcast %cst_7 : f32 to vector<64x128xf32>
    %14 = arith.addf %13, %12 : vector<64x128xf32>
    %15 = arith.mulf %9, %14 : vector<64x128xf32>
    %16 = arith.mulf %6, %15 : vector<64x128xf32>
    %c0_8 = arith.constant 0 : index
    %c0_9 = arith.constant 0 : index
    %17 = vector.load %arg4[%c0_8, %c0_9] : memref<16x64xf32, #tpu.memory_space<vmem>>, vector<16x64xf32>
    %cst_10 = arith.constant dense<0.000000e+00> : vector<16x128xf32>
    %18 = tpu.matmul %17, %16, %cst_10 {dimension_numbers = #tpu.dot_dimension_numbers<[1], [0], [0], [1], [0, 0, 1, 1], [], []>} : vector<16x64xf32>, vector<64x128xf32>, vector<16x128xf32> -> vector<16x128xf32>
    %c0_11 = arith.constant 0 : index
    %c0_12 = arith.constant 0 : index
    %19 = vector.load %arg5[%c0_11, %c0_12] : memref<16x1xf32, #tpu.memory_space<vmem>>, vector<16x1xf32>
    %20 = vector.broadcast %19 : vector<16x1xf32> to vector<16x128xf32>
    %21 = arith.addf %18, %20 : vector<16x128xf32>
    %c0_13 = arith.constant 0 : index
    %c0_14 = arith.constant 0 : index
    %22 = vector.load %arg6[%c0_13, %c0_14] : memref<16x128xf32, #tpu.memory_space<vmem>>, vector<16x128xf32>
    tpu.vector_store %arg6[%c0_13, %c0_14], %21 {strides = array<i32>} : memref<16x128xf32, #tpu.memory_space<vmem>>, vector<16x128xf32>,
    return
  }
  func.func @transform_0(%arg0: i32) -> (i32, i32) {
    %c0_i32 = arith.constant 0 : i32
    %c0_i32_0 = arith.constant 0 : i32
    return %c0_i32, %arg0 : i32, i32
  }
  func.func @transform_1(%arg0: i32) -> (i32, i32) {
    %c0_i32 = arith.constant 0 : i32
    %c0_i32_0 = arith.constant 0 : i32
    %c0_i32_1 = arith.constant 0 : i32
    return %c0_i32, %c0_i32_0 : i32, i32
  }
  func.func @transform_2(%arg0: i32) -> (i32, i32) {
    %c0_i32 = arith.constant 0 : i32
    %c0_i32_0 = arith.constant 0 : i32
    %c0_i32_1 = arith.constant 0 : i32
    return %c0_i32, %c0_i32_0 : i32, i32
  }
  func.func @transform_3(%arg0: i32) -> (i32, i32) {
    %c0_i32 = arith.constant 0 : i32
    %c0_i32_0 = arith.constant 0 : i32
    %c0_i32_1 = arith.constant 0 : i32
    return %c0_i32, %c0_i32_0 : i32, i32
  }
  func.func @transform_4(%arg0: i32) -> (i32, i32) {
    %c0_i32 = arith.constant 0 : i32
    %c0_i32_0 = arith.constant 0 : i32
    %c0_i32_1 = arith.constant 0 : i32
    return %c0_i32, %c0_i32_0 : i32, i32
  }
  func.func @transform_5(%arg0: i32) -> (i32, i32) {
    %c0_i32 = arith.constant 0 : i32
    %c0_i32_0 = arith.constant 0 : i32
    return %c0_i32, %arg0 : i32, i32
  }
}

</mosaic_0001>

<bundles_post_ra>
// kernel: feedforward.1
= control target key start
LH: loop header
LB: loop body
LE: loop exit
PB: predicated region body
PF: predicated region fallthrough
CT: control target
= control target key end

     0   :  { %vm134_vm0 = vcmask 130048   ;;  %v590_v3 = vmov 0   ;;  %vm390_vm1 = vcmask 523264   ;;  %s781_s0 = inlined_call_operand.vmem [shape: f32[16,128], index: 0, kind: input, shape index: {}]   ;;  %s782_s1 = inlined_call_operand.vmem [shape: f32[128,16], index: 1, kind: input, shape index: {}]   ;;  %s783_s2 = inlined_call_operand.vmem [shape: f32[128,1], index: 2, kind: input, shape index: {}]   ;;  %s784_s4 = inlined_call_operand.vmem [shape: f32[16,1], index: 4, kind: input, shape index: {}]   ;;  %s785_s3 = inlined_call_operand.vmem [shape: f32[16,64], index: 3, kind: input, shape index: {}]   ;;  %s786_s5 = inlined_call_operand.vmem [shape: f32[16,128], index: 5, kind: output, shape index: {}]  }
   0x1   :  { %v21_v0 = vld [vmem:[%s781_s0 + $0x8] sm:$0xff]  ;;  %v20_v1 = vld [vmem:[%s781_s0] sm:$0xff]  ;;  %572 = vset.pattern.permute.xlu0 %v590_v3  ;;  %573 = vset.pattern.permute.xlu1 %v590_v3  ;;  %v24_v5 = vld [vmem:[%s782_s1 + $0x10] sm:$0xff] }
   0x2   :  { %v22_v2 = vld [vmem:[%s782_s1] sm:$0xff]  ;;  %524 = vmatprep.subr.mxu0 %v21_v0  ;;  %v23_v4 = vld [vmem:[%s782_s1 + $0x8] sm:$0xff]  ;;  %v25_v6 = vld [vmem:[%s782_s1 + $0x18] sm:$0xff] }
   0x3   :  { %528 = vmatprep.mubr.msk.f32.mxu0 %vm134_vm0, %v22_v2  ;;  %525 = vmatpush3.msra.mxu0 %v21_v0  ;;  %v53_v7 = vld [vmem:[%s783_s2 + $0x78] sm:$0xff]  ;;  %v51_v8 = vld [vmem:[%s783_s2 + $0x68] sm:$0xff]  ;;  %v26_v9 = vld [vmem:[%s782_s1 + $0x20] sm:$0xff] }
   0x4   :  { %526 = vmatprep.subr.mxu0 %v20_v1  ;;  %131 = vperm.xlu0 %572, %v53_v7   ;;  %v52_v10 = vld [vmem:[%s783_s2 + $0x70] sm:$0xff]  ;;  %v50_v11 = vld [vmem:[%s783_s2 + $0x60] sm:$0xff]  ;;  %v27_v12 = vld [vmem:[%s782_s1 + $0x28] sm:$0xff] }
   0x5   :  { %527 = vmatpush3.msra.mxu0 %v20_v1  ;;  %121 = vperm.xlu1 %573, %v51_v8   ;;  %v28_v13 = vld [vmem:[%s782_s1 + $0x30] sm:$0xff]  ;;  %v49_v14 = vld [vmem:[%s783_s2 + $0x58] sm:$0xff]  ;;  %v30_v17 = vld [vmem:[%s782_s1 + $0x40] sm:$0xff] }
   0x6   :  { %529 = vmatmul.mubr.msk.f32.vlgmr.msra.gmra.mxu0 %vm134_vm0, %v23_v4  ;;  %v48_v15 = vld [vmem:[%s783_s2 + $0x50] sm:$0xff]  ;;  %v29_v16 = vld [vmem:[%s782_s1 + $0x38] sm:$0xff]  ;;  %v47_v18 = vld [vmem:[%s783_s2 + $0x48] sm:$0xff] }
   0x7   :  { %531 = vmatprep.mubr.msk.f32.mxu0 %vm134_vm0, %v24_v5  ;;  %v46_v19 = vld [vmem:[%s783_s2 + $0x40] sm:$0xff]  ;;  %v31_v20 = vld [vmem:[%s782_s1 + $0x48] sm:$0xff]  ;;  %v32_v21 = vld [vmem:[%s782_s1 + $0x50] sm:$0xff] }
   0x8   :  { %126 = vperm.xlu0 %572, %v52_v10   ;;  %v45_v22 = vld [vmem:[%s783_s2 + $0x38] sm:$0xff]  ;;  %v44_v23 = vld [vmem:[%s783_s2 + $0x30] sm:$0xff]  ;;  %v34_v25 = vld [vmem:[%s782_s1 + $0x60] sm:$0xff] }
   0x9   :  { %116 = vperm.xlu1 %573, %v50_v11   ;;  %v33_v24 = vld [vmem:[%s782_s1 + $0x58] sm:$0xff]  ;;  %v43_v26 = vld [vmem:[%s783_s2 + $0x28] sm:$0xff]  ;;  %v42_v27 = vld [vmem:[%s783_s2 + $0x20] sm:$0xff] }
   0xa   :  { %532 = vmatmul.mubr.msk.f32.gmra.mxu0 %vm134_vm0, %v25_v6  ;;  %v35_v28 = vld [vmem:[%s782_s1 + $0x68] sm:$0xff]  ;;  %v36_v29 = vld [vmem:[%s782_s1 + $0x70] sm:$0xff]  ;;  %v41_v30 = vld [vmem:[%s783_s2 + $0x18] sm:$0xff] }
   0xb   :  { %534 = vmatprep.mubr.msk.f32.mxu0 %vm134_vm0, %v26_v9  ;;  %v40_v31 = vld [vmem:[%s783_s2 + $0x10] sm:$0xff]  ;;  %v37_v32 = vld [vmem:[%s782_s1 + $0x78] sm:$0xff]  ;;  %v39_v33 = vld [vmem:[%s783_s2 + $0x8] sm:$0xff] }
   0xc   :  { %111 = vperm.xlu0 %572, %v49_v14   ;;  %v38_v34 = vld [vmem:[%s783_s2] sm:$0xff]  ;;  %v379_v36 = vld [vmem:[%s784_s4 + $0x8] sm:$0xff] }
   0xd   :  { %106 = vperm.xlu1 %573, %v48_v15   ;;  %v378_v35 = vld [vmem:[%s784_s4] sm:$0xff] }
   0xe   :  { %535 = vmatmul.mubr.msk.f32.gmra.mxu0 %vm134_vm0, %v27_v12  ;;  %v376_v37 = vld [vmem:[%s785_s3] sm:$0xff] }
   0xf   :  { %537 = vmatprep.mubr.msk.f32.mxu0 %vm134_vm0, %v28_v13  ;;  %568 = vmatprep.mubr.msk.f32.mxu1 %vm390_vm1, %v376_v37 }
  0x10   :  { %101 = vperm.xlu0 %572, %v47_v18  }
  0x11   :  { %96 = vperm.xlu1 %573, %v46_v19  }
  0x12   :  { %538 = vmatmul.mubr.msk.f32.gmra.mxu0 %vm134_vm0, %v29_v16 }
  0x13   :  { %540 = vmatprep.mubr.msk.f32.mxu0 %vm134_vm0, %v30_v17 }
  0x14   :  { %91 = vperm.xlu0 %572, %v45_v22  }
  0x15   :  { %86 = vperm.xlu1 %573, %v44_v23  }
  0x16   :  { %541 = vmatmul.mubr.msk.f32.gmra.mxu0 %vm134_vm0, %v31_v20 }
  0x17   :  { %543 = vmatprep.mubr.msk.f32.mxu0 %vm134_vm0, %v32_v21 }
  0x18   :  { %81 = vperm.xlu0 %572, %v43_v26  }
  0x19   :  { %76 = vperm.xlu1 %573, %v42_v27  }
  0x1a   :  { %544 = vmatmul.mubr.msk.f32.gmra.mxu0 %vm134_vm0, %v33_v24 }
  0x1b   :  { %546 = vmatprep.mubr.msk.f32.mxu0 %vm134_vm0, %v34_v25 }
  0x1c   :  { %71 = vperm.xlu0 %572, %v41_v30  }
  0x1d   :  { %66 = vperm.xlu1 %573, %v40_v31  }
  0x1e   :  { %547 = vmatmul.mubr.msk.f32.gmra.mxu0 %vm134_vm0, %v35_v28 }
  0x1f   :  { %549 = vmatprep.mubr.msk.f32.mxu0 %vm134_vm0, %v36_v29 }
  0x20   :  { %61 = vperm.xlu0 %572, %v39_v33  }
  0x21   :  { %56 = vperm.xlu1 %573, %v38_v34  }
  0x22   :  { %550 = vmatmul.mubr.msk.f32.gmra.mxu0 %vm134_vm0, %v37_v32 }
  0x24   :  { %382 = vperm.xlu0 %572, %v378_v35  }
  0x25   :  { %387 = vperm.xlu1 %573, %v379_v36  }
  0x7f   :  { %v132_v44 = vpop.permute.xlu0 %131 }
  0x80   :  { %v122_v46 = vpop.permute.xlu1 %121 }
  0x83   :  { %v127_v49 = vpop.permute.xlu0 %126 }
  0x84   :  { %v117_v51 = vpop.permute.xlu1 %116 }
  0x87   :  { %v112_v54 = vpop.permute.xlu0 %111 }
  0x88   :  { %v107_v57 = vpop.permute.xlu1 %106 }
  0x8b   :  { %v102_v2 = vpop.permute.xlu0 %101 }
  0x8c   :  { %v97_v8 = vpop.permute.xlu1 %96 }
  0x8f   :  { %v92_v14 = vpop.permute.xlu0 %91 }
  0x90   :  { %v87_v15 = vpop.permute.xlu1 %86 }
  0x93   :  { %v82_v19 = vpop.permute.xlu0 %81 }
  0x94   :  { %v77_v25 = vpop.permute.xlu1 %76 }
  0xc6   :  { %v749_v38 = vpop.f32.mrf.mxu0 }
  0xc8   :  { %v751_v39 = vpop.f32.mrf.mxu0 }
  0xca   :  { %v753_v40 = vpop.f32.mrf.mxu0 }
  0xcc   :  { %v755_v41 = vpop.f32.mrf.mxu0 }
  0xce   :  { %v757_v42 = vpop.f32.mrf.mxu0 }
  0xd0   :  { %v759_v43 = vpop.f32.mrf.mxu0 }
  0xd2   :  { %v539_v45 = vpop.f32.mrf.mxu0 }
  0xd3   :  { %v285_v26 = vadd.f32 %v539_v45, %v92_v14 }
  0xd4   :  { %v279_v47 = vpop.f32.mrf.mxu0 }
  0xd5   :  { %v280_v33 = vadd.f32 %v279_v47, %v87_v15 }
  0xd6   :  { %v542_v48 = vpop.f32.mrf.mxu0 }
  0xd7   :  { %v295_v5 = vadd.f32 %v542_v48, %v102_v2  ;;  %v72_v48 = vpop.permute.xlu0 %71 }
  0xd8   :  { %v289_v50 = vpop.f32.mrf.mxu0 }
  0xd9   :  { %v761_v9 = vadd.f32 %v289_v50, %v97_v8  ;;  %v337_v12 = vmul.f32 0.70710677, %v295_v5  ;;  %v377_v8 = vld [vmem:[%s785_s3 + $0x8] sm:$0xff] }
  0xda   :  { %v545_v52 = vpop.f32.mrf.mxu0 }
  0xdb   :  { %v305_v58 = vadd.f32 %v545_v52, %v112_v54  ;;  %v336_v13 = vmul.f32 0.70710677, %v761_v9  ;;  %v67_v54 = vpop.permute.xlu1 %66 }
  0xdc   :  { %v299_v53 = vpop.f32.mrf.mxu0 }
  0xdd   :  { %v300_v63 = vadd.f32 %v299_v53, %v107_v57  ;;  %v339_v3 = vmul.f32 0.70710677, %v305_v58  ;;  %v331_v50 = vmul.f32 0.5, %v305_v58 }
  0xde   :  { %v548_v55 = vpop.f32.mrf.mxu0 }
  0xdf   :  { %v315_v56 = vadd.f32 %v548_v55, %v122_v46  ;;  %v338_v10 = vmul.f32 0.70710677, %v300_v63  ;;  %v270_v55 = vadd.f32 %v759_v43, %v77_v25  ;;  %v330_v57 = vmul.f32 0.5, %v300_v63  ;;  %v57_v63 = vpop.permute.xlu1 %56 }
  0xe0   :  { %v309_v59 = vpop.f32.mrf.mxu0  ;;  %v328_v43 = vmul.f32 0.5, %v761_v9 }
  0xe1   :  { %v341_v60 = vmul.f32 0.70710677, %v315_v56  ;;  %v310_v61 = vadd.f32 %v309_v59, %v117_v51  ;;  %v333_v27 = vmul.f32 0.5, %v315_v56 }
  0xe2   :  { %v551_v62 = vpop.f32.mrf.mxu0 }
  0xe3   :  { %v340_v0 = vmul.f32 0.70710677, %v310_v61  ;;  %v325_v1 = vadd.f32 %v551_v62, %v132_v44  ;;  %574 = verf.f32 %v341_v60  ;;  %v332_v34 = vmul.f32 0.5, %v310_v61 }
  0xe4   :  { %v319_v4 = vpop.f32.mrf.mxu0  ;;  %v265_v60 = vadd.f32 %v753_v40, %v72_v48  ;;  %v329_v61 = vmul.f32 0.5, %v295_v5 }
  0xe5   :  { %v343_v6 = vmul.f32 0.70710677, %v325_v1  ;;  %v320_v7 = vadd.f32 %v319_v4, %v127_v49  ;;  %576 = verf.f32 %v340_v0  ;;  %v335_v22 = vmul.f32 0.5, %v325_v1  ;;  %v62_v0 = vpop.permute.xlu0 %61 }
  0xe6   :  { %v275_v49 = vadd.f32 %v757_v42, %v82_v19  ;;  %v260_v1 = vadd.f32 %v755_v41, %v67_v54  ;;  %v255_v4 = vadd.f32 %v749_v38, %v62_v0  ;;  %v388_v38 = vpop.permute.xlu1 %387 }
  0xe7   :  { %578 = verf.f32 %v343_v6  ;;  %v342_v11 = vmul.f32 0.70710677, %v320_v7  ;;  %v334_v29 = vmul.f32 0.5, %v320_v7  ;;  %v250_v6 = vadd.f32 %v751_v39, %v57_v63 }
  0xe8   :  { %580 = verf.f32 %v339_v3 }
  0xe9   :  { %582 = verf.f32 %v342_v11  ;;  %v383_v11 = vpop.permute.xlu0 %382 }
  0xea   :  { %584 = verf.f32 %v338_v10 }
  0xeb   :  { %586 = verf.f32 %v337_v12 }
  0xec   :  { %588 = verf.f32 %v336_v13 }
  0xf0   :  { %v575_v16 = vpop.eup %574 }
  0xf1   :  { %v357_v21 = vadd.f32 1.0, %v575_v16 }
  0xf2   :  { %v577_v17 = vpop.eup %576 }
  0xf3   :  { %v356_v28 = vadd.f32 1.0, %v577_v17  ;;  %v365_v36 = vmul.f32 %v357_v21, %v333_v27 }
  0xf4   :  { %v579_v18 = vpop.eup %578 }
  0xf5   :  { %v581_v20 = vpop.eup %580  ;;  %v359_v23 = vadd.f32 1.0, %v579_v18  ;;  %v364_v52 = vmul.f32 %v356_v28, %v332_v34  ;;  %v373_v59 = vmul.f32 %v365_v36, %v275_v49 }
  0xf6   :  { %v583_v24 = vpop.eup %582  ;;  %v355_v35 = vadd.f32 1.0, %v581_v20 }
  0xf7   :  { %v358_v30 = vadd.f32 1.0, %v583_v24  ;;  %v367_v31 = vmul.f32 %v359_v23, %v335_v22  ;;  %v585_v32 = vpop.eup %584  ;;  %v372_v62 = vmul.f32 %v364_v52, %v270_v55 }
  0xf8   :  { %v587_v46 = vpop.eup %586  ;;  %v354_v51 = vadd.f32 1.0, %v585_v32  ;;  %v363_v56 = vmul.f32 %v355_v35, %v331_v50 }
  0xf9   :  { %v366_v37 = vmul.f32 %v358_v30, %v334_v29  ;;  %v375_v44 = vmul.f32 %v367_v31, %v285_v26  ;;  %v589_v53 = vpop.eup %588  ;;  %v353_v47 = vadd.f32 1.0, %v587_v46 }
  0xfa   :  { %v352_v42 = vadd.f32 1.0, %v589_v53  ;;  %v362_v58 = vmul.f32 %v354_v51, %v330_v57  ;;  %v371_v3 = vmul.f32 %v363_v56, %v265_v60 }
  0xfb   :  { %552 = vmatprep.subr.mxu1 %v375_v44  ;;  %v374_v45 = vmul.f32 %v366_v37, %v280_v33  ;;  %v361_v2 = vmul.f32 %v353_v47, %v329_v61 }
  0xfc   :  { %553 = vmatpush3.msra.mxu1 %v375_v44  ;;  %v360_v40 = vmul.f32 %v352_v42, %v328_v43  ;;  %v370_v5 = vmul.f32 %v362_v58, %v260_v1 }
  0xfd   :  { %554 = vmatprep.subr.mxu1 %v374_v45  ;;  %v369_v7 = vmul.f32 %v361_v2, %v255_v4 }
  0xfe   :  { %555 = vmatpush3.msra.mxu1 %v374_v45  ;;  %v368_v41 = vmul.f32 %v360_v40, %v250_v6 }
  0xff   :  { %556 = vmatprep.subr.mxu1 %v373_v59 }
 0x100   :  { %557 = vmatpush3.msra.mxu1 %v373_v59 }
 0x101   :  { %558 = vmatprep.subr.mxu1 %v372_v62 }
 0x102   :  { %559 = vmatpush3.msra.mxu1 %v372_v62 }
 0x103   :  { %560 = vmatprep.subr.mxu1 %v371_v3 }
 0x104   :  { %561 = vmatpush3.msra.mxu1 %v371_v3 }
 0x105   :  { %562 = vmatprep.subr.mxu1 %v370_v5 }
 0x106   :  { %563 = vmatpush3.msra.mxu1 %v370_v5 }
 0x107   :  { %564 = vmatprep.subr.mxu1 %v369_v7 }
 0x108   :  { %565 = vmatpush3.msra.mxu1 %v369_v7 }
 0x109   :  { %566 = vmatprep.subr.mxu1 %v368_v41 }
 0x10a   :  { %567 = vmatpush3.msra.mxu1 %v368_v41 }
 0x10b   :  { %569 = vmatmul.mubr.msk.f32.vlgmr.msra.gmra.mxu1 %vm390_vm1, %v377_v8 }
 0x1cb   :  { %v570_v9 = vpop.f32.mrf.mxu1 }
 0x1cc   :  { %v469_v10 = vadd.f32 %v570_v9, %v388_v38 }
 0x1cd   :  { %v463_v12 = vpop.f32.mrf.mxu1 }
 0x1ce   :  { %473 = vst [vmem:[%s786_s5 + $0x8] sm:$0xff] %v469_v10  ;;  %v464_v39 = vadd.f32 %v463_v12, %v383_v11 }
 0x1d0   :  { %472 = vst [vmem:[%s786_s5] sm:$0xff] %v464_v39 }

</bundles_post_ra>
